<compile_context>
chip_gen: v5e
topology: v5e:2x2
jax: 0.10.0
libtpu: 0.0.40
codegen_flags: <defaults>
</compile_context>

<pallas_src>
import jax
import jax.numpy as jnp
import numpy as np
from jax.experimental import pallas as pl
from jax.experimental.pallas import tpu as pltpu


# ---------------------------------------------------------------------------
# Kernel
# ---------------------------------------------------------------------------
def skconv_kernel(x0_ref, xb_ref, bn_s_ref, bn_b_ref,
                  wfc_ref, bfc_ref, wfcs_ref, bfcs_ref,
                  out_ref, sum_acc, attn_acc):
    """Two-phase SKConv kernel.

    Grid = (2, num_tiles): axis 0 = phase (0: pool, 1: fuse), axis 1 = spatial
    tile. The grid iterates with the last axis fastest, so every pooling step
    runs before any fuse step.

      x0_ref   (NC, TS)       residual tile (only used in phase 1)
      xb_ref   (B, NC, TS)    branch-input tiles
      bn_s_ref (B, NC, 1)     folded BN scale  gamma / sqrt(var + eps)
      bn_b_ref (B, NC, 1)     folded BN bias   beta - mean * scale
      wfc_ref  (N*d, NC)      block-diag fc weight  kron(eye(N), fc_w) / S
      bfc_ref  (N*d, 1)
      wfcs_ref (B*NC, N*d)    stacked block-diag fcs weights
      bfcs_ref (B*NC, 1)
      out_ref  (NC, TS)
      sum_acc  VMEM (NC, 1)   f32 spatial-sum accumulator (lives across tiles)
      attn_acc VMEM (B, NC, 1) f32 per-branch attention weights
    """
    phase = pl.program_id(0)
    tile = pl.program_id(1)
    B, NC, TS = xb_ref.shape

    def bn_relu(b):
        # Recomputed in both phases (1 FMA + 1 max of VPU slack per element)
        # instead of keeping B full-size (NC, S) intermediates live in VMEM.
        x = xb_ref[b].astype(jnp.float32)
        return jnp.maximum(x * bn_s_ref[b] + bn_b_ref[b], 0.0)

    # ------------------ phase 0: streaming global average pool --------------
    @pl.when(phase == 0)
    def _pool():
        @pl.when(tile == 0)
        def _init():
            sum_acc[...] = jnp.zeros_like(sum_acc)

        fea_u = bn_relu(0)
        for b in range(1, B):
            fea_u = fea_u + bn_relu(b)
        sum_acc[...] += jnp.sum(fea_u, axis=-1, keepdims=True)

    # -------- phase boundary: squeeze-excite attention (tiny, runs once) ----
    @pl.when((phase == 1) & (tile == 0))
    def _attend():
        # 1/S is folded into wfc_ref, so sums -> mean happens inside the dot.
        fea_z = jnp.dot(wfc_ref[...], sum_acc[...],
                        preferred_element_type=jnp.float32) + bfc_ref[...]    # (N*d, 1)
        # Single stacked matmul instead of B separate per-branch matmuls.
        logits = jnp.dot(wfcs_ref[...], fea_z,
                         preferred_element_type=jnp.float32) + bfcs_ref[...]  # (B*NC, 1)

        per_branch = [logits[b * NC:(b + 1) * NC, :] for b in range(B)]
        m = per_branch[0]
        for b in range(1, B):
            m = jnp.maximum(m, per_branch[b])
        exps = [jnp.exp(v - m) for v in per_branch]
        denom = exps[0]
        for b in range(1, B):
            denom = denom + exps[b]
        # EUP approximate reciprocal seed + one Newton step: keeps the divide
        # off the VPU critical path while retaining ~f32 accuracy.
        inv = pl.reciprocal(denom, approx=True)
        inv = inv * (2.0 - denom * inv)
        for b in range(B):
            attn_acc[b] = exps[b] * inv

    # ------------------ phase 1: attention-weighted fuse + residual ---------
    @pl.when(phase == 1)
    def _fuse():
        acc = bn_relu(0) * attn_acc[0]
        for b in range(1, B):
            acc = acc + bn_relu(b) * attn_acc[b]
        out_ref[...] = (acc + x0_ref[...].astype(jnp.float32)).astype(out_ref.dtype)


# ---------------------------------------------------------------------------
# Wrapper
# ---------------------------------------------------------------------------
def _vmem_bytes(B, NC, Nd, TS):
    item = 4
    streamed = 2 * item * TS * (B * NC + 2 * NC)        # double-buffered xb, x0, out tiles
    resident = item * (2 * B * NC + Nd * NC + Nd + B * NC * Nd + B * NC)
    scratch = item * (NC + B * NC)
    return streamed + resident + scratch


def _choose_tile(S, B, NC, Nd, budget=40 * 1024 * 1024):
    # Prefer large lane-dense tiles (>=512 lanes ~ HBM roofline), but stay
    # inside a VMEM budget that is also safe for v7x's 64 MiB.
    if S % 128 == 0:
        for ts in (2048, 1024, 512, 256, 128):
            if S % ts == 0 and _vmem_bytes(B, NC, Nd, ts) <= budget:
                return ts
    return S  # odd spatial size: single full-width tile


def skconv_pallas(X_list, params):
    """X_list: list of M arrays (N, C, H, W); params: SKConv parameters."""
    x0 = X_list[0]
    N, C, H, W = x0.shape
    S = H * W
    B = len(X_list) - 1
    NC = N * C
    d = params["fc_w"].shape[0]
    Nd = N * d
    f32 = jnp.float32

    # Flatten N x C onto the sublane axis; spatial stays lane-dense.
    x0_f = x0.reshape(NC, S)
    xb_f = jnp.stack([x.reshape(NC, S) for x in X_list[1:]], axis=0)       # (B, NC, S)

    # Fold eval-mode BatchNorm into a per-channel affine, broadcast over batch
    # so it indexes the flattened (n*C + c) sublane axis directly.
    eps = 1e-5
    bn_scale = params["bn_gamma"].astype(f32) / jnp.sqrt(params["bn_var"].astype(f32) + eps)
    bn_bias = params["bn_beta"].astype(f32) - params["bn_mean"].astype(f32) * bn_scale
    bn_scale = jnp.tile(bn_scale, (1, N))[:, :, None]                      # (B, NC, 1)
    bn_bias = jnp.tile(bn_bias, (1, N))[:, :, None]                        # (B, NC, 1)

    # Block-diagonal squeeze-excite weights: keeps the in-kernel attention math
    # in (N*C, 1) column layout (no reshape/transpose inside the kernel).
    eye_n = jnp.eye(N, dtype=f32)
    wfc_blk = jnp.kron(eye_n, params["fc_w"].astype(f32)) / float(S)       # (Nd, NC)
    bfc_col = jnp.tile(params["fc_b"].astype(f32), N)[:, None]             # (Nd, 1)
    wfcs_blk = jnp.concatenate(
        [jnp.kron(eye_n, params["fcs_w"][b].astype(f32)) for b in range(B)], axis=0)   # (B*NC, Nd)
    bfcs_col = jnp.concatenate(
        [jnp.tile(params["fcs_b"][b].astype(f32), N) for b in range(B)])[:, None]      # (B*NC, 1)

    TS = _choose_tile(S, B, NC, Nd)
    num_tiles = S // TS
    vmem_limit = int(min(64 * 1024 * 1024,
                         max(32 * 1024 * 1024, 2 * _vmem_bytes(B, NC, Nd, TS))))

    # TODO(synk): for v7x megacore, split batch N onto a leading "parallel" grid
    # axis; the spatial-tile axis cannot be "parallel" here because it carries
    # the cross-tile pooling accumulator and the attention scratch across phases.
    compiler_params = pltpu.CompilerParams(
        dimension_semantics=("arbitrary", "arbitrary"),
        vmem_limit_bytes=vmem_limit)

    cost = pl.CostEstimate(
        flops=int(9 * B * NC * S),
        transcendentals=int(B * NC + NC),
        bytes_accessed=int(4 * NC * S * (2 * B + 2)))

    out_flat = pl.pallas_call(
        skconv_kernel,
        out_shape=jax.ShapeDtypeStruct((NC, S), x0.dtype),
        grid=(2, num_tiles),
        in_specs=[
            # x0 stays pinned to block 0 during phase 0 (no extra DMA there).
            pl.BlockSpec((NC, TS), lambda p, t: (0, t * p)),
            pl.BlockSpec((B, NC, TS), lambda p, t: (0, 0, t)),
            pl.BlockSpec((B, NC, 1), lambda p, t: (0, 0, 0)),
            pl.BlockSpec((B, NC, 1), lambda p, t: (0, 0, 0)),
            pl.BlockSpec((Nd, NC), lambda p, t: (0, 0)),
            pl.BlockSpec((Nd, 1), lambda p, t: (0, 0)),
            pl.BlockSpec((B * NC, Nd), lambda p, t: (0, 0)),
            pl.BlockSpec((B * NC, 1), lambda p, t: (0, 0)),
        ],
        # Output also pinned to block 0 during phase 0 -> each block is written
        # back exactly once, after its phase-1 step.
        out_specs=pl.BlockSpec((NC, TS), lambda p, t: (0, t * p)),
        scratch_shapes=[pltpu.VMEM((NC, 1), jnp.float32),
                        pltpu.VMEM((B, NC, 1), jnp.float32)],
        compiler_params=compiler_params,
        cost_estimate=cost,
    )(x0_f, xb_f, bn_scale, bn_bias, wfc_blk, bfc_col, wfcs_blk, bfcs_col)

    return out_flat.reshape(N, C, H, W)


# ---------------------------------------------------------------------------
# Pure-JAX reference (eval-mode BN), mirrors the PyTorch forward
# ---------------------------------------------------------------------------
def skconv_reference(X_list, params):
    eps = 1e-5
    B = len(X_list) - 1
    feas = []
    for b in range(B):
        x = X_list[b + 1]
        scale = params["bn_gamma"][b] / jnp.sqrt(params["bn_var"][b] + eps)
        bias = params["bn_beta"][b] - params["bn_mean"][b] * scale
        f = jnp.maximum(x * scale[None, :, None, None] + bias[None, :, None, None], 0.0)
        feas.append(f[:, None])                          # (N, 1, C, H, W)
    feas = jnp.concatenate(feas, axis=1)                 # (N, B, C, H, W)
    fea_U = feas.sum(axis=1)                             # (N, C, H, W)
    fea_s = fea_U.mean(axis=-1).mean(axis=-1)            # (N, C)
    fea_z = fea_s @ params["fc_w"].T + params["fc_b"]
    vecs = [fea_z @ params["fcs_w"][b].T + params["fcs_b"][b] for b in range(B)]
    attn = jax.nn.softmax(jnp.stack(vecs, axis=1), axis=1)    # (N, B, C)
    attn = attn[:, :, :, None, None]
    fea_v = (feas * attn).sum(axis=1)
    return fea_v + X_list[0]


# ---------------------------------------------------------------------------
# Test harness
# ---------------------------------------------------------------------------
def _make_case(key, N, C, H, W, M=3, r=2, L=32):
    d = max(int(C / r), L)
    B = M - 1
    keys = jax.random.split(key, M + 6 + 2 * B)
    X_list = [jax.random.normal(keys[i], (N, C, H, W), jnp.float32) for i in range(M)]
    params = {
        "bn_gamma": 1.0 + 0.1 * jax.random.normal(keys[M + 0], (B, C), jnp.float32),
        "bn_beta": 0.1 * jax.random.normal(keys[M + 1], (B, C), jnp.float32),
        "bn_mean": 0.2 * jax.random.normal(keys[M + 2], (B, C), jnp.float32),
        "bn_var": jnp.abs(jax.random.normal(keys[M + 3], (B, C), jnp.float32)) + 0.5,
        "fc_w": 0.3 * jax.random.normal(keys[M + 4], (d, C), jnp.float32),    # nn.Linear(C, d)
        "fc_b": 0.1 * jax.random.normal(keys[M + 5], (d,), jnp.float32),
        "fcs_w": [0.3 * jax.random.normal(keys[M + 6 + i], (C, d), jnp.float32)   # nn.Linear(d, C)
                  for i in range(B)],
        "fcs_b": [0.1 * jax.random.normal(keys[M + 6 + B + i], (C,), jnp.float32)
                  for i in range(B)],
    }
    return X_list, params


if __name__ == "__main__":
    root = jax.random.PRNGKey(0)
    k1, k2 = jax.random.split(root)

    cases = [
        ("features=4, M=3, 16x16 spatial (single tile)", k1, 2, 4, 16, 16),
        ("features=4, M=3, 8x48 spatial (3 tiles)", k2, 2, 4, 8, 48),
    ]
    for name, key, N, C, H, W in cases:
        X_list, params = _make_case(key, N, C, H, W)
        out = jax.block_until_ready(skconv_pallas(X_list, params))
        ref = jax.block_until_ready(skconv_reference(X_list, params))
        # 1e-4 tolerance leaves margin for the EUP approx-reciprocal (+ Newton
        # step) softmax denominator; everything else accumulates in f32.
        np.testing.assert_allclose(np.asarray(out), np.asarray(ref),
                                   rtol=1e-4, atol=1e-4, err_msg=name)

    print("KERNEL_OK")
</pallas_src>

<mosaic_0001>
module attributes {stable_mosaic.version = 11 : i64} {
  func.func @skconv_kernel(%arg0: i32, %arg1: i32, %arg2: memref<8x256xf32, #tpu.memory_space<vmem>>, %arg3: memref<2x8x256xf32, #tpu.memory_space<vmem>>, %arg4: memref<2x8x1xf32, #tpu.memory_space<vmem>>, %arg5: memref<2x8x1xf32, #tpu.memory_space<vmem>>, %arg6: memref<64x8xf32, #tpu.memory_space<vmem>>, %arg7: memref<64x1xf32, #tpu.memory_space<vmem>>, %arg8: memref<16x64xf32, #tpu.memory_space<vmem>>, %arg9: memref<16x1xf32, #tpu.memory_space<vmem>>, %arg10: memref<8x256xf32, #tpu.memory_space<vmem>>, %arg11: memref<8x1xf32, #tpu.memory_space<vmem>>, %arg12: memref<2x8x1xf32, #tpu.memory_space<vmem>>) attributes {dimension_semantics = [#tpu.dimension_semantics<arbitrary>, #tpu.dimension_semantics<arbitrary>], iteration_bounds = array<i64: 2, 1>, scalar_prefetch = 0 : i64, scratch_operands = 2 : i64, tpu.core_type = #tpu.core_type<tc>, window_params = [{transform_indices = @transform_0, window_bounds = array<i64: 8, 256>}, {transform_indices = @transform_1, window_bounds = array<i64: 2, 8, 256>}, {pipeline_mode = #tpu.pipeline_mode<synchronous>, transform_indices = @transform_2, window_bounds = array<i64: 2, 8, 1>}, {pipeline_mode = #tpu.pipeline_mode<synchronous>, transform_indices = @transform_3, window_bounds = array<i64: 2, 8, 1>}, {pipeline_mode = #tpu.pipeline_mode<synchronous>, transform_indices = @transform_4, window_bounds = array<i64: 64, 8>}, {pipeline_mode = #tpu.pipeline_mode<synchronous>, transform_indices = @transform_5, window_bounds = array<i64: 64, 1>}, {pipeline_mode = #tpu.pipeline_mode<synchronous>, transform_indices = @transform_6, window_bounds = array<i64: 16, 64>}, {pipeline_mode = #tpu.pipeline_mode<synchronous>, transform_indices = @transform_7, window_bounds = array<i64: 16, 1>}, {transform_indices = @transform_8, window_bounds = array<i64: 8, 256>}]} {
    %c0_i32 = arith.constant 0 : i32
    %0 = arith.cmpi eq, %arg0, %c0_i32 : i32
    %1 = arith.extui %0 : i1 to i32
    %c0_i32_0 = arith.constant 0 : i32
    %2 = arith.cmpi ne, %1, %c0_i32_0 : i32
    scf.if %2 {
      %c0_i32_5 = arith.constant 0 : i32
      %11 = arith.cmpi eq, %arg1, %c0_i32_5 : i32
      %12 = arith.extui %11 : i1 to i32
      %c0_i32_6 = arith.constant 0 : i32
      %13 = arith.cmpi ne, %12, %c0_i32_6 : i32
      scf.if %13 {
        %cst_29 = arith.constant 0.000000e+00 : f32
        %44 = vector.broadcast %cst_29 : f32 to vector<8x1xf32>
        %c0_30 = arith.constant 0 : index
        %c0_31 = arith.constant 0 : index
        %45 = vector.load %arg11[%c0_30, %c0_31] : memref<8x1xf32, #tpu.memory_space<vmem>>, vector<8x1xf32>
        tpu.vector_store %arg11[%c0_30, %c0_31], %44 {strides = array<i32>} : memref<8x1xf32, #tpu.memory_space<vmem>>, vector<8x1xf32>,
      } else {
      }
      %c0 = arith.constant 0 : index
      %c0_7 = arith.constant 0 : index
      %c0_8 = arith.constant 0 : index
      %14 = vector.load %arg3[%c0, %c0_7, %c0_8] : memref<2x8x256xf32, #tpu.memory_space<vmem>>, vector<1x8x256xf32>
      %15 = vector.shape_cast %14 : vector<1x8x256xf32> to vector<8x256xf32>
      %c0_9 = arith.constant 0 : index
      %c0_10 = arith.constant 0 : index
      %c0_11 = arith.constant 0 : index
      %16 = vector.load %arg4[%c0_9, %c0_10, %c0_11] : memref<2x8x1xf32, #tpu.memory_space<vmem>>, vector<1x8x1xf32>
      %17 = vector.shape_cast %16 : vector<1x8x1xf32> to vector<8x1xf32>
      %18 = vector.broadcast %17 : vector<8x1xf32> to vector<8x256xf32>
      %19 = arith.mulf %15, %18 : vector<8x256xf32>
      %c0_12 = arith.constant 0 : index
      %c0_13 = arith.constant 0 : index
      %c0_14 = arith.constant 0 : index
      %20 = vector.load %arg5[%c0_12, %c0_13, %c0_14] : memref<2x8x1xf32, #tpu.memory_space<vmem>>, vector<1x8x1xf32>
      %21 = vector.shape_cast %20 : vector<1x8x1xf32> to vector<8x1xf32>
      %22 = vector.broadcast %21 : vector<8x1xf32> to vector<8x256xf32>
      %23 = arith.addf %19, %22 : vector<8x256xf32>
      %cst = arith.constant 0.000000e+00 : f32
      %24 = vector.broadcast %cst : f32 to vector<8x256xf32>
      %25 = arith.maximumf %23, %24 : vector<8x256xf32>
      %c1 = arith.constant 1 : index
      %c0_15 = arith.constant 0 : index
      %c0_16 = arith.constant 0 : index
      %26 = vector.load %arg3[%c1, %c0_15, %c0_16] : memref<2x8x256xf32, #tpu.memory_space<vmem>>, vector<1x8x256xf32>
      %27 = vector.shape_cast %26 : vector<1x8x256xf32> to vector<8x256xf32>
      %c1_17 = arith.constant 1 : index
      %c0_18 = arith.constant 0 : index
      %c0_19 = arith.constant 0 : index
      %28 = vector.load %arg4[%c1_17, %c0_18, %c0_19] : memref<2x8x1xf32, #tpu.memory_space<vmem>>, vector<1x8x1xf32>
      %29 = vector.shape_cast %28 : vector<1x8x1xf32> to vector<8x1xf32>
      %30 = vector.broadcast %29 : vector<8x1xf32> to vector<8x256xf32>
      %31 = arith.mulf %27, %30 : vector<8x256xf32>
      %c1_20 = arith.constant 1 : index
      %c0_21 = arith.constant 0 : index
      %c0_22 = arith.constant 0 : index
      %32 = vector.load %arg5[%c1_20, %c0_21, %c0_22] : memref<2x8x1xf32, #tpu.memory_space<vmem>>, vector<1x8x1xf32>
      %33 = vector.shape_cast %32 : vector<1x8x1xf32> to vector<8x1xf32>
      %34 = vector.broadcast %33 : vector<8x1xf32> to vector<8x256xf32>
      %35 = arith.addf %31, %34 : vector<8x256xf32>
      %cst_23 = arith.constant 0.000000e+00 : f32
      %36 = vector.broadcast %cst_23 : f32 to vector<8x256xf32>
      %37 = arith.maximumf %35, %36 : vector<8x256xf32>
      %38 = arith.addf %25, %37 : vector<8x256xf32>
      %c0_24 = arith.constant 0 : index
      %c0_25 = arith.constant 0 : index
      %39 = vector.load %arg11[%c0_24, %c0_25] : memref<8x1xf32, #tpu.memory_space<vmem>>, vector<8x1xf32>
      %cst_26 = arith.constant dense<0.000000e+00> : vector<8xf32>
      %40 = vector.multi_reduction <add>, %38, %cst_26 [1] : vector<8x256xf32> to vector<8xf32>
      %41 = vector.shape_cast %40 : vector<8xf32> to vector<8x1xf32>
      %42 = arith.addf %39, %41 : vector<8x1xf32>
      %c0_27 = arith.constant 0 : index
      %c0_28 = arith.constant 0 : index
      %43 = vector.load %arg11[%c0_27, %c0_28] : memref<8x1xf32, #tpu.memory_space<vmem>>, vector<8x1xf32>
      tpu.vector_store %arg11[%c0_27, %c0_28], %42 {strides = array<i32>} : memref<8x1xf32, #tpu.memory_space<vmem>>, vector<8x1xf32>,
    } else {
    }
    %c1_i32 = arith.constant 1 : i32
    %3 = arith.cmpi eq, %arg0, %c1_i32 : i32
    %c0_i32_1 = arith.constant 0 : i32
    %4 = arith.cmpi eq, %arg1, %c0_i32_1 : i32
    %5 = arith.andi %3, %4 : i1
    %6 = arith.extui %5 : i1 to i32
    %c0_i32_2 = arith.constant 0 : i32
    %7 = arith.cmpi ne, %6, %c0_i32_2 : i32
    scf.if %7 {
      %c0 = arith.constant 0 : index
      %c0_5 = arith.constant 0 : index
      %11 = vector.load %arg6[%c0, %c0_5] : memref<64x8xf32, #tpu.memory_space<vmem>>, vector<64x8xf32>
      %c0_6 = arith.constant 0 : index
      %c0_7 = arith.constant 0 : index
      %12 = vector.load %arg11[%c0_6, %c0_7] : memref<8x1xf32, #tpu.memory_space<vmem>>, vector<8x1xf32>
      %cst = arith.constant dense<0.000000e+00> : vector<64x1xf32>
      %13 = tpu.matmul %11, %12, %cst {dimension_numbers = #tpu.dot_dimension_numbers<[1], [0], [0], [1], [0, 0, 1, 1], [], []>} : vector<64x8xf32>, vector<8x1xf32>, vector<64x1xf32> -> vector<64x1xf32>
      %c0_8 = arith.constant 0 : index
      %c0_9 = arith.constant 0 : index
      %14 = vector.load %arg7[%c0_8, %c0_9] : memref<64x1xf32, #tpu.memory_space<vmem>>, vector<64x1xf32>
      %15 = arith.addf %13, %14 : vector<64x1xf32>
      %c0_10 = arith.constant 0 : index
      %c0_11 = arith.constant 0 : index
      %16 = vector.load %arg8[%c0_10, %c0_11] : memref<16x64xf32, #tpu.memory_space<vmem>>, vector<16x64xf32>
      %cst_12 = arith.constant dense<0.000000e+00> : vector<16x1xf32>
      %17 = tpu.matmul %16, %15, %cst_12 {dimension_numbers = #tpu.dot_dimension_numbers<[1], [0], [0], [1], [0, 0, 1, 1], [], []>} : vector<16x64xf32>, vector<64x1xf32>, vector<16x1xf32> -> vector<16x1xf32>
      %c0_13 = arith.constant 0 : index
      %c0_14 = arith.constant 0 : index
      %18 = vector.load %arg9[%c0_13, %c0_14] : memref<16x1xf32, #tpu.memory_space<vmem>>, vector<16x1xf32>
      %19 = arith.addf %17, %18 : vector<16x1xf32>
      %20 = vector.extract_strided_slice %19 {offsets = [0, 0], sizes = [8, 1], strides = [1, 1]} : vector<16x1xf32> to vector<8x1xf32>
      %21 = vector.extract_strided_slice %19 {offsets = [8, 0], sizes = [8, 1], strides = [1, 1]} : vector<16x1xf32> to vector<8x1xf32>
      %22 = arith.maximumf %20, %21 : vector<8x1xf32>
      %23 = arith.subf %20, %22 : vector<8x1xf32>
      %24 = math.exp %23 : vector<8x1xf32>
      %25 = arith.subf %21, %22 : vector<8x1xf32>
      %26 = math.exp %25 : vector<8x1xf32>
      %27 = arith.addf %24, %26 : vector<8x1xf32>
      %28 = tpu.reciprocal %27 {approx = true} : vector<8x1xf32> -> vector<8x1xf32>
      %29 = arith.mulf %27, %28 : vector<8x1xf32>
      %cst_15 = arith.constant 2.000000e+00 : f32
      %30 = vector.broadcast %cst_15 : f32 to vector<8x1xf32>
      %31 = arith.subf %30, %29 : vector<8x1xf32>
      %32 = arith.mulf %28, %31 : vector<8x1xf32>
      %33 = arith.mulf %24, %32 : vector<8x1xf32>
      %c0_16 = arith.constant 0 : index
      %c0_17 = arith.constant 0 : index
      %c0_18 = arith.constant 0 : index
      %34 = vector.load %arg12[%c0_16, %c0_17, %c0_18] : memref<2x8x1xf32, #tpu.memory_space<vmem>>, vector<1x8x1xf32>
      %35 = vector.shape_cast %34 : vector<1x8x1xf32> to vector<8x1xf32>
      %36 = vector.shape_cast %33 : vector<8x1xf32> to vector<1x8x1xf32>
      tpu.vector_store %arg12[%c0_16, %c0_17, %c0_18], %36 {strides = array<i32>} : memref<2x8x1xf32, #tpu.memory_space<vmem>>, vector<1x8x1xf32>,
      %37 = arith.mulf %26, %32 : vector<8x1xf32>
      %c1 = arith.constant 1 : index
      %c0_19 = arith.constant 0 : index
      %c0_20 = arith.constant 0 : index
      %38 = vector.load %arg12[%c1, %c0_19, %c0_20] : memref<2x8x1xf32, #tpu.memory_space<vmem>>, vector<1x8x1xf32>
      %39 = vector.shape_cast %38 : vector<1x8x1xf32> to vector<8x1xf32>
      %40 = vector.shape_cast %37 : vector<8x1xf32> to vector<1x8x1xf32>
      tpu.vector_store %arg12[%c1, %c0_19, %c0_20], %40 {strides = array<i32>} : memref<2x8x1xf32, #tpu.memory_space<vmem>>, vector<1x8x1xf32>,
    } else {
    }
    %c1_i32_3 = arith.constant 1 : i32
    %8 = arith.cmpi eq, %arg0, %c1_i32_3 : i32
    %9 = arith.extui %8 : i1 to i32
    %c0_i32_4 = arith.constant 0 : i32
    %10 = arith.cmpi ne, %9, %c0_i32_4 : i32
    scf.if %10 {
      %c0 = arith.constant 0 : index
      %c0_5 = arith.constant 0 : index
      %c0_6 = arith.constant 0 : index
      %11 = vector.load %arg3[%c0, %c0_5, %c0_6] : memref<2x8x256xf32, #tpu.memory_space<vmem>>, vector<1x8x256xf32>
      %12 = vector.shape_cast %11 : vector<1x8x256xf32> to vector<8x256xf32>
      %c0_7 = arith.constant 0 : index
      %c0_8 = arith.constant 0 : index
      %c0_9 = arith.constant 0 : index
      %13 = vector.load %arg4[%c0_7, %c0_8, %c0_9] : memref<2x8x1xf32, #tpu.memory_space<vmem>>, vector<1x8x1xf32>
      %14 = vector.shape_cast %13 : vector<1x8x1xf32> to vector<8x1xf32>
      %15 = vector.broadcast %14 : vector<8x1xf32> to vector<8x256xf32>
      %16 = arith.mulf %12, %15 : vector<8x256xf32>
      %c0_10 = arith.constant 0 : index
      %c0_11 = arith.constant 0 : index
      %c0_12 = arith.constant 0 : index
      %17 = vector.load %arg5[%c0_10, %c0_11, %c0_12] : memref<2x8x1xf32, #tpu.memory_space<vmem>>, vector<1x8x1xf32>
      %18 = vector.shape_cast %17 : vector<1x8x1xf32> to vector<8x1xf32>
      %19 = vector.broadcast %18 : vector<8x1xf32> to vector<8x256xf32>
      %20 = arith.addf %16, %19 : vector<8x256xf32>
      %cst = arith.constant 0.000000e+00 : f32
      %21 = vector.broadcast %cst : f32 to vector<8x256xf32>
      %22 = arith.maximumf %20, %21 : vector<8x256xf32>
      %c0_13 = arith.constant 0 : index
      %c0_14 = arith.constant 0 : index
      %c0_15 = arith.constant 0 : index
      %23 = vector.load %arg12[%c0_13, %c0_14, %c0_15] : memref<2x8x1xf32, #tpu.memory_space<vmem>>, vector<1x8x1xf32>
      %24 = vector.shape_cast %23 : vector<1x8x1xf32> to vector<8x1xf32>
      %25 = vector.broadcast %24 : vector<8x1xf32> to vector<8x256xf32>
      %26 = arith.mulf %22, %25 : vector<8x256xf32>
      %c1 = arith.constant 1 : index
      %c0_16 = arith.constant 0 : index
      %c0_17 = arith.constant 0 : index
      %27 = vector.load %arg3[%c1, %c0_16, %c0_17] : memref<2x8x256xf32, #tpu.memory_space<vmem>>, vector<1x8x256xf32>
      %28 = vector.shape_cast %27 : vector<1x8x256xf32> to vector<8x256xf32>
      %c1_18 = arith.constant 1 : index
      %c0_19 = arith.constant 0 : index
      %c0_20 = arith.constant 0 : index
      %29 = vector.load %arg4[%c1_18, %c0_19, %c0_20] : memref<2x8x1xf32, #tpu.memory_space<vmem>>, vector<1x8x1xf32>
      %30 = vector.shape_cast %29 : vector<1x8x1xf32> to vector<8x1xf32>
      %31 = vector.broadcast %30 : vector<8x1xf32> to vector<8x256xf32>
      %32 = arith.mulf %28, %31 : vector<8x256xf32>
      %c1_21 = arith.constant 1 : index
      %c0_22 = arith.constant 0 : index
      %c0_23 = arith.constant 0 : index
      %33 = vector.load %arg5[%c1_21, %c0_22, %c0_23] : memref<2x8x1xf32, #tpu.memory_space<vmem>>, vector<1x8x1xf32>
      %34 = vector.shape_cast %33 : vector<1x8x1xf32> to vector<8x1xf32>
      %35 = vector.broadcast %34 : vector<8x1xf32> to vector<8x256xf32>
      %36 = arith.addf %32, %35 : vector<8x256xf32>
      %cst_24 = arith.constant 0.000000e+00 : f32
      %37 = vector.broadcast %cst_24 : f32 to vector<8x256xf32>
      %38 = arith.maximumf %36, %37 : vector<8x256xf32>
      %c1_25 = arith.constant 1 : index
      %c0_26 = arith.constant 0 : index
      %c0_27 = arith.constant 0 : index
      %39 = vector.load %arg12[%c1_25, %c0_26, %c0_27] : memref<2x8x1xf32, #tpu.memory_space<vmem>>, vector<1x8x1xf32>
      %40 = vector.shape_cast %39 : vector<1x8x1xf32> to vector<8x1xf32>
      %41 = vector.broadcast %40 : vector<8x1xf32> to vector<8x256xf32>
      %42 = arith.mulf %38, %41 : vector<8x256xf32>
      %43 = arith.addf %26, %42 : vector<8x256xf32>
      %c0_28 = arith.constant 0 : index
      %c0_29 = arith.constant 0 : index
      %44 = vector.load %arg2[%c0_28, %c0_29] : memref<8x256xf32, #tpu.memory_space<vmem>>, vector<8x256xf32>
      %45 = arith.addf %43, %44 : vector<8x256xf32>
      %c0_30 = arith.constant 0 : index
      %c0_31 = arith.constant 0 : index
      %46 = vector.load %arg10[%c0_30, %c0_31] : memref<8x256xf32, #tpu.memory_space<vmem>>, vector<8x256xf32>
      tpu.vector_store %arg10[%c0_30, %c0_31], %45 {strides = array<i32>} : memref<8x256xf32, #tpu.memory_space<vmem>>, vector<8x256xf32>,
    } else {
    }
    return
  }
  func.func @transform_0(%arg0: i32, %arg1: i32) -> (i32, i32) {
    %0 = arith.muli %arg1, %arg0 : i32
    %c0_i32 = arith.constant 0 : i32
    %c0_i32_0 = arith.constant 0 : i32
    return %c0_i32, %0 : i32, i32
  }
  func.func @transform_1(%arg0: i32, %arg1: i32) -> (i32, i32, i32) {
    %c0_i32 = arith.constant 0 : i32
    %c0_i32_0 = arith.constant 0 : i32
    %c0_i32_1 = arith.constant 0 : i32
    return %c0_i32, %c0_i32_0, %arg1 : i32, i32, i32
  }
  func.func @transform_2(%arg0: i32, %arg1: i32) -> (i32, i32, i32) {
    %c0_i32 = arith.constant 0 : i32
    %c0_i32_0 = arith.constant 0 : i32
    %c0_i32_1 = arith.constant 0 : i32
    %c0_i32_2 = arith.constant 0 : i32
    return %c0_i32, %c0_i32_0, %c0_i32_1 : i32, i32, i32
  }
  func.func @transform_3(%arg0: i32, %arg1: i32) -> (i32, i32, i32) {
    %c0_i32 = arith.constant 0 : i32
    %c0_i32_0 = arith.constant 0 : i32
    %c0_i32_1 = arith.constant 0 : i32
    %c0_i32_2 = arith.constant 0 : i32
    return %c0_i32, %c0_i32_0, %c0_i32_1 : i32, i32, i32
  }
  func.func @transform_4(%arg0: i32, %arg1: i32) -> (i32, i32) {
    %c0_i32 = arith.constant 0 : i32
    %c0_i32_0 = arith.constant 0 : i32
    %c0_i32_1 = arith.constant 0 : i32
    return %c0_i32, %c0_i32_0 : i32, i32
  }
  func.func @transform_5(%arg0: i32, %arg1: i32) -> (i32, i32) {
    %c0_i32 = arith.constant 0 : i32
    %c0_i32_0 = arith.constant 0 : i32
    %c0_i32_1 = arith.constant 0 : i32
    return %c0_i32, %c0_i32_0 : i32, i32
  }
  func.func @transform_6(%arg0: i32, %arg1: i32) -> (i32, i32) {
    %c0_i32 = arith.constant 0 : i32
    %c0_i32_0 = arith.constant 0 : i32
    %c0_i32_1 = arith.constant 0 : i32
    return %c0_i32, %c0_i32_0 : i32, i32
  }
  func.func @transform_7(%arg0: i32, %arg1: i32) -> (i32, i32) {
    %c0_i32 = arith.constant 0 : i32
    %c0_i32_0 = arith.constant 0 : i32
    %c0_i32_1 = arith.constant 0 : i32
    return %c0_i32, %c0_i32_0 : i32, i32
  }
  func.func @transform_8(%arg0: i32, %arg1: i32) -> (i32, i32) {
    %0 = arith.muli %arg1, %arg0 : i32
    %c0_i32 = arith.constant 0 : i32
    %c0_i32_0 = arith.constant 0 : i32
    return %c0_i32, %0 : i32, i32
  }
}

</mosaic_0001>

<bundles_post_ra>
// kernel: tpu_custom_call.1
= control target key start
LH: loop header
LB: loop body
LE: loop exit
PB: predicated region body
PF: predicated region fallthrough
CT: control target
= control target key end

     0   :  { %13 = vsyncpa [#allocation5], 0  ;;  %s1087_s0 = inlined_call_operand.vmem [shape: f32[8,256], index: 0, kind: input, shape index: {}]   ;;  %s1088_s1 = inlined_call_operand.vmem [shape: f32[2,8,256], index: 1, kind: input, shape index: {}]   ;;  %s1089_s2 = inlined_call_operand.vmem [shape: f32[2,8,1], index: 2, kind: input, shape index: {}]   ;;  %s1090_s3 = inlined_call_operand.vmem [shape: f32[2,8,1], index: 3, kind: input, shape index: {}]   ;;  %s1091_s4 = inlined_call_operand.vmem [shape: f32[64,8], index: 4, kind: input, shape index: {}]   ;;  %s1092_s5 = inlined_call_operand.vmem [shape: f32[64,1], index: 5, kind: input, shape index: {}]   ;;  %s1093_s6 = inlined_call_operand.vmem [shape: f32[16,64], index: 6, kind: input, shape index: {}]   ;;  %s1094_s7 = inlined_call_operand.vmem [shape: f32[16,1], index: 7, kind: input, shape index: {}]   ;;  %s1095_s8 = inlined_call_operand.hbm [shape: f32[8,256], index: 8, kind: output, shape index: {}]  }
   0x1   :  { %15 = vsyncpa [#allocation5 + $0x1], 0  ;;  %s923_s27 = smov 0   ;;  %s925_s28 = smov 0  }
   0x2   :  { %s927_s29 = smov 0  }
   0x3 LB: > { %s725_s30 = sadd.s32 4294967295, %s872_s29   ;;  %s726_s9 = sadd.s32 4294967294, %s872_s29   ;;  %s872_s29 = sphi %s927_s29, %s21_s29   ;;  %s868_s28 = sphi %s925_s28, %s1097_s28   ;;  %s864_s27 = sphi %s923_s27, %s1096_s27  }
   0x4   : > { %s33_s10 = sadd.s32 1, %s868_s28  ;;  %p731_p0 = scmp.ge.s32.totalorder %s872_s29, 1 }
   0x5   : > { %p35_p1 = scmp.ge.s32.totalorder %s33_s10, 2  ;;  %p295_p2 = scmp.lt.s32.totalorder %s872_s29, 3 }
   0x7   : > { %s1099_s10 = smov (%p35_p1, %s33_s10), 0  ;;  %p296_p3 = pnand %p731_p0, %p295_p2 }
   0x8   : > { %p732_p4 = scmp.ne.s32.totalorder (!%p296_p3), %s864_s27, 0 }
   0x9   : > { %299 = sbr.rel (%p296_p3) target bundleno = 759 (0x2f7), region = 52 }
   0xe   : > { %354 = sbr.rel (%p732_p4) target bundleno = 273 (0x111), region = 56 }
  0x13   : > { %v371_v0 = vld [vmem:[%s1090_s3] sm:$0xff]  ;;  %v874_v2 = vmov 0   ;;  %v736_v3 = vld [vmem:[%s1090_s3 + $0x8] sm:$0xff]  ;;  %v733_v11 = vld [vmem:[%s1088_s1 + $0x10] sm:$0xff]  ;;  %vm359_vm0 = vcmask 7168   ;;  %v875_v28 = vmov 0.0  }
  0x14   : > { %v363_v1 = vld [vmem:[%s1089_s2] sm:$0xff]  ;;  %808 = vset.pattern.permute.xlu1 %v874_v2  ;;  %807 = vset.pattern.permute.xlu0 %v874_v2  ;;  %v735_v4 = vld [vmem:[%s1089_s2 + $0x8] sm:$0xff]  ;;  %v734_v12 = vld [vmem:[%s1088_s1 + $0x18] sm:$0xff]  ;;  %360 = vst.msk [vmem:[#allocation2] sm:$0xff] %vm359_vm0, %v875_v28 }
  0x15   : > { %374 = vperm.xlu1 %808, %v371_v0   ;;  %366 = vperm.xlu0 %807, %v363_v1   ;;  %v361_v7 = vld [vmem:[%s1088_s1] sm:$0xff]  ;;  %v362_v8 = vld [vmem:[%s1088_s1 + $0x8] sm:$0xff] }
  0x1b   : > { %v406_v29 = vld [vmem:[#allocation2] sm:$0xff] }
  0x1d   : > { %397 = vperm.xlu1 %808, %v736_v3   ;;  %388 = vperm.xlu0 %807, %v735_v4  }
  0x87   : > { %v375_v5 = vpop.permute.xlu1 %374  ;;  %v367_v6 = vpop.permute.xlu0 %366 }
  0x88   : > { %v369_v9 = vmul.f32 %v367_v6, %v361_v7  ;;  %v370_v10 = vmul.f32 %v367_v6, %v362_v8 }
  0x8a   : > { %v377_v14 = vadd.f32 %v375_v5, %v369_v9  ;;  %v378_v15 = vadd.f32 %v375_v5, %v370_v10 }
  0x8c   : > { %v379_v23 = vmax.f32 %v377_v14, 0.0  ;;  %v380_v24 = vmax.f32 %v378_v15, 0.0 }
  0x8f   : > { %v389_v13 = vpop.permute.xlu0 %388  ;;  %v398_v18 = vpop.permute.xlu1 %397 }
  0x90   : > { %v391_v16 = vmul.f32 %v733_v11, %v389_v13  ;;  %v392_v17 = vmul.f32 %v734_v12, %v389_v13 }
  0x92   : > { %v400_v19 = vadd.f32 %v398_v18, %v391_v16  ;;  %v401_v20 = vadd.f32 %v398_v18, %v392_v17 }
  0x94   : > { %v402_v21 = vmax.f32 %v400_v19, 0.0  ;;  %v403_v22 = vmax.f32 %v401_v20, 0.0 }
  0x96   : > { %v404_v25 = vadd.f32 %v402_v21, %v379_v23  ;;  %v405_v26 = vadd.f32 %v403_v22, %v380_v24 }
  0x98   : > { %v407_v27 = vadd.f32 %v405_v26, %v404_v25 }
  0x9a   : > { %408 = vadd.xlane.f32.xlu2 %v407_v27 }
 0x10d   : > { %v409_v30 = vpop.xlane.xlu2 %408 }
 0x10e   : > { %v410_v31 = vadd.f32 %v409_v30, %v406_v29 }
 0x110   : > { %412 = vst.msk [vmem:[#allocation2] sm:$0xff] %vm359_vm0, %v410_v31 }
 0x111 PF: > { %p413_p5 = scmp.eq.s32.totalorder %s864_s27, 1 }
 0x112   : > { %v422_v33 = vld [vmem:[%s1091_s4 + $0x18] sm:$0xff] (%p413_p5)  ;;  %vm436_vm1 = vcmask (%p413_p5), 64512   ;;  %v425_v34 = vld [vmem:[%s1091_s4 + $0x30] sm:$0xff] (%p413_p5)  ;;  %v419_v35 = vld [vmem:[%s1091_s4] sm:$0xff] (%p413_p5)  ;;  %vm506_vm2 = vcmask (%p413_p5), 523264   ;;  %vm549_vm3 = vcmask (%p413_p5), 7168  }
 0x113   : > { %418 = sbr.rel (!%p413_p5) target bundleno = 609 (0x261), region = 64  ;;  %v423_v36 = vld [vmem:[%s1091_s4 + $0x20] sm:$0xff] (%p413_p5)  ;;  %v426_v37 = vld [vmem:[%s1091_s4 + $0x38] sm:$0xff] (%p413_p5)  ;;  %v420_v38 = vld [vmem:[%s1091_s4 + $0x8] sm:$0xff] (%p413_p5) }
 0x114   : > { %v424_v39 = vld [vmem:[%s1091_s4 + $0x28] sm:$0xff] (%p413_p5)  ;;  %v421_v40 = vld [vmem:[%s1091_s4 + $0x10] sm:$0xff] (%p413_p5)  ;;  %v435_v44 = vld [vmem:[%s1092_s5 + $0x38] sm:$0xff] (%p413_p5) }
 0x115   : > { %v434_v46 = vld [vmem:[%s1092_s5 + $0x30] sm:$0xff] (%p413_p5)  ;;  %v433_v51 = vld [vmem:[%s1092_s5 + $0x28] sm:$0xff] (%p413_p5)  ;;  %v432_v52 = vld [vmem:[%s1092_s5 + $0x20] sm:$0xff] (%p413_p5) }
 0x116   : > { %v431_v55 = vld [vmem:[%s1092_s5 + $0x18] sm:$0xff] (%p413_p5)  ;;  %v430_v56 = vld [vmem:[%s1092_s5 + $0x10] sm:$0xff] (%p413_p5)  ;;  %v429_v61 = vld [vmem:[%s1092_s5 + $0x8] sm:$0xff] (%p413_p5) }
 0x117   : > { %v427_v32 = vld [vmem:[#allocation2] sm:$0xff] (%p413_p5)  ;;  %v503_v1 = vld [vmem:[%s1093_s6 + $0x8] sm:$0xff] (%p413_p5) }
 0x118   : > { %758 = vmatpush.msra.mxu2 %v427_v32  ;;  %759 = vmatpush.msra.mxu3 %v427_v32  ;;  %v428_v62 = vld [vmem:[%s1092_s5] sm:$0xff]  ;;  %v505_v5 = vld [vmem:[%s1094_s7 + $0x8] sm:$0xff] }
 0x119   : > { %741 = vmatmul.msk.f32.vlgmr.msra.gmra.mxu2 %vm436_vm1, %v422_v33  ;;  %744 = vmatmul.msk.f32.vlgmr.msra.gmra.mxu3 %vm436_vm1, %v425_v34  ;;  %v502_v2 = vld [vmem:[%s1093_s6] sm:$0xff] }
 0x11a   : > { %476 = vmatpush.msra.mxu0 %v427_v32  ;;  %v504_v3 = vld [vmem:[%s1094_s7] sm:$0xff] }
 0x11b   : > { %738 = vmatmul.msk.f32.vlgmr.msra.gmra.mxu0 %vm436_vm1, %v419_v35 }
 0x121   : > { %742 = vmatmul.msk.f32.gmra.mxu2 %vm436_vm1, %v423_v36  ;;  %745 = vmatmul.msk.f32.gmra.mxu3 %vm436_vm1, %v426_v37 }
 0x123   : > { %739 = vmatmul.msk.f32.gmra.mxu0 %vm436_vm1, %v420_v38 }
 0x129   : > { %743 = vmatmul.msk.f32.gmra.mxu2 %vm436_vm1, %v424_v39 }
 0x12b   : > { %740 = vmatmul.msk.f32.gmra.mxu0 %vm436_vm1, %v421_v40 }
 0x198   : > { %v478_v41 = vpop.f32.mrf.mxu0 }
 0x199   : > { %v479_v0 = vadd.f32 %v478_v41, %v428_v62 }
 0x19c   : > { %v487_v42 = vpop.f32.mrf.mxu2  ;;  %v496_v43 = vpop.f32.mrf.mxu3 }
 0x19d   : > { %v497_v50 = vadd.f32 %v496_v43, %v434_v46  ;;  %v488_v59 = vadd.f32 %v487_v42, %v431_v55 }
 0x1a0   : > { %v481_v45 = vpop.f32.mrf.mxu0 }
 0x1a1   : > { %v482_v63 = vadd.f32 %v481_v45, %v429_v61 }
 0x1a4   : > { %v490_v47 = vpop.f32.mrf.mxu2  ;;  %v499_v48 = vpop.f32.mrf.mxu3 }
 0x1a5   : > { %v500_v49 = vadd.f32 %v499_v48, %v435_v44  ;;  %v491_v58 = vadd.f32 %v490_v47, %v432_v52 }
 0x1a7   : > { %521 = vmatpush.msra.mxu1 %v500_v49  ;;  %760 = vmatpush.msrb.mxu3 %v500_v49 }
 0x1a8   : > { %v484_v57 = vpop.f32.mrf.mxu0 }
 0x1a9   : > { %522 = vmatpush.msra.mxu1 %v497_v50  ;;  %761 = vmatpush.msrb.mxu3 %v497_v50  ;;  %v485_v60 = vadd.f32 %v484_v57, %v430_v56 }
 0x1ac   : > { %v493_v53 = vpop.f32.mrf.mxu2 }
 0x1ad   : > { %v494_v54 = vadd.f32 %v493_v53, %v433_v51 }
 0x1af   : > { %523 = vmatpush.msra.mxu1 %v494_v54  ;;  %762 = vmatpush.msrb.mxu3 %v494_v54 }
 0x1b1   : > { %524 = vmatpush.msra.mxu1 %v491_v58  ;;  %763 = vmatpush.msrb.mxu3 %v491_v58 }
 0x1b3   : > { %525 = vmatpush.msra.mxu1 %v488_v59  ;;  %764 = vmatpush.msrb.mxu3 %v488_v59 }
 0x1b5   : > { %526 = vmatpush.msra.mxu1 %v485_v60  ;;  %765 = vmatpush.msrb.mxu3 %v485_v60 }
 0x1b7   : > { %527 = vmatpush.msra.mxu1 %v482_v63  ;;  %766 = vmatpush.msrb.mxu3 %v482_v63 }
 0x1b9   : > { %528 = vmatpush.msra.mxu1 %v479_v0  ;;  %767 = vmatpush.msrb.mxu3 %v479_v0 }
 0x1ba   : > { %747 = vmatmul.msk.f32.vlgmr.msrb.gmra.mxu3 %vm506_vm2, %v503_v1  ;;  %746 = vmatmul.msk.f32.vlgmr.msra.gmra.mxu1 %vm506_vm2, %v502_v2 }
 0x237   : > { %v530_v4 = vpop.f32.mrf.mxu1 }
 0x238   : > { %v531_v6 = vadd.f32 %v530_v4, %v504_v3 }
 0x23d   : > { %v533_v7 = vpop.f32.mrf.mxu3 }
 0x23e   : > { %v534_v8 = vadd.f32 %v533_v7, %v505_v5 }
 0x240   : > { %v536_v9 = vmax.f32 %v531_v6, %v534_v8 }
 0x242   : > { %v537_v10 = vsub.f32 %v531_v6, %v536_v9  ;;  %v540_v11 = vsub.f32 %v534_v8, %v536_v9 }
 0x244   : > { %v538_v12 = vmul.f32 1.442695, %v537_v10  ;;  %v541_v13 = vmul.f32 1.442695, %v540_v11 }
 0x246   : > { %809 = vpow2.f32 %v538_v12 }
 0x247   : > { %811 = vpow2.f32 %v541_v13 }
 0x24c   : > { %v810_v14 = vpop.eup %809 }
 0x24d   : > { %v812_v15 = vpop.eup %811 }
 0x24e   : > { %v543_v16 = vadd.f32 %v812_v15, %v810_v14 }
 0x250   : > { %813 = vrcp.f32 %v543_v16 }
 0x256   : > { %v814_v17 = vpop.eup %813 }
 0x257   : > { %v545_v18 = vmul.f32 %v814_v17, %v543_v16 }
 0x259   : > { %v546_v19 = vsub.f32 2.0, %v545_v18 }
 0x25b   : > { %v547_v20 = vmul.f32 %v814_v17, %v546_v19 }
 0x25d   : > { %v548_v21 = vmul.f32 %v810_v14, %v547_v20  ;;  %v551_v22 = vmul.f32 %v812_v15, %v547_v20 }
 0x25f   : > { %550 = vst.msk [vmem:[#allocation3] sm:$0xff] %vm549_vm3, %v548_v21 }
 0x260   : > { %553 = vst.msk [vmem:[#allocation3 + $0x8] sm:$0xff] %vm549_vm3, %v551_v22 }
 0x261 PF: > { %p748_p6 = scmp.ne.s32.totalorder %s864_s27, 1 }
 0x263   : > { %556 = sbr.rel (%p748_p6) target bundleno = 755 (0x2f3), region = 68 }
 0x268   : > { %v567_v23 = vld [vmem:[%s1090_s3] sm:$0xff]  ;;  %v876_v25 = vmov 0   ;;  %v577_v26 = vld [vmem:[#allocation3] sm:$0xff]  ;;  %v609_v29 = vld [vmem:[#allocation3 + $0x8] sm:$0xff] }
 0x269   : > { %v559_v24 = vld [vmem:[%s1089_s2] sm:$0xff]  ;;  %816 = vset.pattern.permute.xlu1 %v876_v25  ;;  %815 = vset.pattern.permute.xlu0 %v876_v25  ;;  %v752_v27 = vld [vmem:[%s1090_s3 + $0x8] sm:$0xff]  ;;  %v749_v37 = vld [vmem:[%s1088_s1 + $0x10] sm:$0xff] }
 0x26a   : > { %570 = vperm.xlu1 %816, %v567_v23   ;;  %562 = vperm.xlu0 %815, %v559_v24   ;;  %v751_v28 = vld [vmem:[%s1089_s2 + $0x8] sm:$0xff]  ;;  %v557_v32 = vld [vmem:[%s1088_s1] sm:$0xff]  ;;  %v750_v38 = vld [vmem:[%s1088_s1 + $0x18] sm:$0xff] }
 0x26b   : > { %817 = vset.pattern.permute.xlu2 %v876_v25  ;;  %v558_v33 = vld [vmem:[%s1088_s1 + $0x8] sm:$0xff]  ;;  %v619_v56 = vld [vmem:[%s1087_s0] sm:$0xff] }
 0x26c   : > { %580 = vperm.xlu2 %817, %v577_v26   ;;  %v620_v57 = vld [vmem:[%s1087_s0 + $0x8] sm:$0xff] }
 0x272   : > { %601 = vperm.xlu1 %816, %v752_v27   ;;  %592 = vperm.xlu0 %815, %v751_v28  }
 0x274   : > { %612 = vperm.xlu2 %817, %v609_v29  }
 0x2c6   : > { %v581_v36 = vpop.permute.xlu2 %580 }
 0x2ce   : > { %v613_v51 = vpop.permute.xlu2 %612 }
 0x2dc   : > { %v571_v30 = vpop.permute.xlu1 %570  ;;  %v563_v31 = vpop.permute.xlu0 %562 }
 0x2dd   : > { %v565_v34 = vmul.f32 %v563_v31, %v557_v32  ;;  %v566_v35 = vmul.f32 %v563_v31, %v558_v33 }
 0x2df   : > { %v573_v39 = vadd.f32 %v571_v30, %v565_v34  ;;  %v574_v40 = vadd.f32 %v571_v30, %v566_v35 }
 0x2e1   : > { %v575_v45 = vmax.f32 %v573_v39, 0.0  ;;  %v576_v46 = vmax.f32 %v574_v40, 0.0 }
 0x2e3   : > { %v583_v52 = vmul.f32 %v581_v36, %v575_v45  ;;  %v584_v53 = vmul.f32 %v581_v36, %v576_v46 }
 0x2e4   : > { %v593_v41 = vpop.permute.xlu0 %592  ;;  %v602_v44 = vpop.permute.xlu1 %601 }
 0x2e5   : > { %v595_v42 = vmul.f32 %v749_v37, %v593_v41  ;;  %v596_v43 = vmul.f32 %v750_v38, %v593_v41 }
 0x2e7   : > { %v604_v47 = vadd.f32 %v602_v44, %v595_v42  ;;  %v605_v48 = vadd.f32 %v602_v44, %v596_v43 }
 0x2e9   : > { %v606_v49 = vmax.f32 %v604_v47, 0.0  ;;  %v607_v50 = vmax.f32 %v605_v48, 0.0 }
 0x2eb   : > { %v615_v54 = vmul.f32 %v613_v51, %v606_v49  ;;  %v616_v55 = vmul.f32 %v613_v51, %v607_v50 }
 0x2ed   : > { %v617_v58 = vadd.f32 %v615_v54, %v583_v52  ;;  %v618_v59 = vadd.f32 %v616_v55, %v584_v53 }
 0x2ef   : > { %v621_v60 = vadd.f32 %v619_v56, %v617_v58  ;;  %v622_v61 = vadd.f32 %v620_v57, %v618_v59 }
 0x2f1   : > { %623 = vst [vmem:[#allocation4] sm:$0xff] %v621_v60 }
 0x2f2   : > { %624 = vst [vmem:[#allocation4 + $0x8] sm:$0xff] %v622_v61 }
 0x2f3 PF: > { %p776_p7 = scmp.eq.s32.totalorder %s725_s30, 1  ;;  %s642_s24 = sshll.u32 %s1095_s8, 4  ;;  %s643_s24 = int_to_ptr.hbm [resolvable:$true] %s642_s24 }
 0x2f4   : > { %s877_s27 = smov [#allocation4]  }
 0x2f5   : > { %s640_s25 = sshll.u32 %s877_s27, 4  ;;  %s641_s25 = int_to_ptr.vmem [resolvable:$true] %s640_s25 }
 0x2f6   : > { %769 = dma.vmem_to_hbm [thread:$0]  (%p776_p7), %s641_s25, 256, %s643_s24, [#allocation5]  }
 0x2f7 PF: > { %p777_p8 = scmp.ge.s32.totalorder %s872_s29, 2  ;;  %p778_p9 = scmp.eq.s32.totalorder %s726_s9, 1 }
 0x2f9   : > { %p773_p10 = pnand %p778_p9, %p777_p8 }
 0x2fb   : > { %p774_p11 = pneg %p773_p10 }
 0x2fd   : > { %859 = dma.done.wait (%p774_p11), [#allocation5], 256  }
 0x2fe   : > { %861 = vsyncadd (%p774_p11), [#allocation5], 4294967040  ;;  %s21_s29 = sadd.s32 1, %s872_s29   ;;  %s1096_s27 = smov %s868_s28 }
 0x2ff   : > { %p18_p12 = scmp.ge.s32.totalorder %s21_s29, 4   ;;  %s1097_s28 = smov %s1099_s10 }
 0x301   :  { %20 = sbr.rel (!%p18_p12) target bundleno = 3 (0x3), region = 114 }
 0x306   :  { %661 = vsyncpa [#allocation5], 1 }
 0x307   :  { %663 = vsyncpa [#allocation5 + $0x1], 1 }

</bundles_post_ra>
